<compile_context>
chip_gen: v6e
topology: v6e:2x2x1
jax: 0.10.0
libtpu: 0.0.40
codegen_flags: <defaults>
</compile_context>

<pallas_src>
import functools

import jax
import jax.numpy as jnp
from jax.experimental import pallas as pl
from jax.experimental.pallas import tpu as pltpu


def _cdiv(a, b):
    return -(-a // b)


def _round_up(v, m):
    return ((v + m - 1) // m) * m


def _device_kind():
    try:
        return jax.devices()[0].device_kind.lower()
    except Exception:  # pragma: no cover - backend not initialized
        return ""


_DEVICE_KIND = _device_kind()
_IS_V5E = ("v5 lite" in _DEVICE_KIND or "v5e" in _DEVICE_KIND
           or "v5lite" in _DEVICE_KIND)
_IS_V7 = "v7" in _DEVICE_KIND


def _vmem_capacity_bytes():
    try:
        return int(pltpu.get_tpu_info().vmem_capacity_bytes)
    except Exception:  # pragma: no cover - fall back to known generation sizes
        return (64 if _IS_V7 else 128) * 2 ** 20


_VMEM_CAPACITY = _vmem_capacity_bytes()


def _pick_default_tiles():
    """(tile_g, tile_n, tile_f) per TPU generation."""
    if _IS_V5E:
        # 4x128 MXU / 0.82 TB/s: bigger g-tiles only push it MXU-bound; grow
        # per-step volume instead to amortize the ~0.35us per-grid-step cost.
        return 128, 1024, 1024
    if _IS_V7:
        # 64 MiB VMEM / ~3.2 TB/s per TC: big tile_g cuts x re-streaming, keep
        # blocks modest so double-buffering fits comfortably.
        return 512, 1024, 512
    # v6e (and default): halve the dominant x HBM stream with tile_g=512 and
    # use ~1K x 1K blocks to amortize per-step overhead.
    return 512, 1024, 1024


_TILE_G, _TILE_N, _TILE_F = _pick_default_tiles()


def _vmem_needed(tile_g, tile_n, tile_f, x_itemsize, out_itemsize, use_scratch):
    """Estimate VMEM: double-buffered blocks + accumulator + intermediates."""
    x_blocks = 2 * tile_n * tile_f * x_itemsize           # x, double-buffered
    out_blocks = 2 * tile_g * tile_f * out_itemsize        # out, double-buffered
    idx_blocks = 2 * tile_n * 4                             # index row
    acc = tile_g * tile_f * 4 if use_scratch else 0         # f32 accumulator
    onehot = tile_g * tile_n * (4 + 4 + max(x_itemsize, 2))  # iota/compare/cast
    x_masked = tile_n * tile_f * x_itemsize                 # edge-block masked copy
    return x_blocks + out_blocks + idx_blocks + acc + onehot + x_masked


def _make_scatter_sum_kernel(n_valid, n_blocks, has_ragged_n,
                             use_acc_scratch, windowed):
    """n_valid (true N), n_blocks (global n-tiles) and flags are trace-time."""

    def kernel(*refs):
        if windowed:
            nstart_ref, nblk_ref, idx_ref, x_ref, out_ref, *scratch = refs
        else:
            idx_ref, x_ref, out_ref, *scratch = refs
        acc_ref = scratch[0] if use_acc_scratch else out_ref
        g_id = pl.program_id(0)
        n_id = pl.program_id(2)

        @pl.when(n_id == 0)
        def _():
            acc_ref[...] = jnp.zeros_like(acc_ref)

        tg = acc_ref.shape[0]
        tn = idx_ref.shape[1]
        group_base = g_id * tg

        def accumulate(x_tile):
            # One-hot membership mask in x's dtype (0/1 exact in bf16) so the
            # MXU runs at bf16 rate and x is never upcast.
            row_ids = (jax.lax.broadcasted_iota(jnp.int32, (tg, tn), 0)
                       + group_base)
            onehot = (row_ids == idx_ref[...]).astype(x_ref.dtype)
            acc_ref[...] += jnp.dot(onehot, x_tile,
                                    preferred_element_type=jnp.float32)  # MXU

        if windowed:
            # CSR fast path: this g-tile only owns n-blocks [0, nblk) of its
            # scalar-prefetched window; everything else is skipped (and the
            # clamped index_map repeats the block index -> no DMA either).
            active = n_id < nblk_ref[g_id]
            actual_blk = nstart_ref[g_id] + n_id

            def gate(cond):
                return jnp.logical_and(active, cond)
        else:
            active = None
            actual_blk = n_id

            def gate(cond):
                return cond

        if has_ragged_n:
            # Only the global last n-block reads rows past N; interior steps
            # take the unmasked (pure MXU) path -- no per-step VALU select.
            is_edge = actual_blk == (n_blocks - 1)

            @pl.when(gate(jnp.logical_not(is_edge)))
            def _():
                accumulate(x_ref[...])

            @pl.when(gate(is_edge))
            def _():
                row = (jax.lax.broadcasted_iota(jnp.int32, (tn, 1), 0)
                       + actual_blk * tn)
                # Zero-mask rows >= N so 0 * garbage (NaN/Inf) can't leak.
                accumulate(jnp.where(row < n_valid, x_ref[...], 0))
        else:
            if windowed:
                @pl.when(active)
                def _():
                    accumulate(x_ref[...])
            else:
                accumulate(x_ref[...])

        if use_acc_scratch:
            @pl.when(n_id == pl.num_programs(2) - 1)
            def _():
                out_ref[...] = acc_ref[...].astype(out_ref.dtype)

    return kernel


@functools.partial(jax.jit,
                   static_argnames=("dim_size", "tile_n", "tile_g", "tile_f"))
def pallas_scatter_sum(x, index, dim_size, ptr=None, *,
                       tile_n=_TILE_N, tile_g=_TILE_G, tile_f=_TILE_F):
    """Sum-aggregate rows of x [N, F] into dim_size groups given index [N].

    If `ptr` (CSR boundaries, i.e. sorted index) is also supplied, a
    scalar-prefetched data-dependent index_map streams each x row ~once
    instead of once per g-tile.
    """
    N, F = x.shape
    out_dtype = x.dtype
    itemsize = x.dtype.itemsize
    out_itemsize = jnp.dtype(out_dtype).itemsize

    # ---- tile selection: problem-clamped, hardware-aligned, VMEM-budgeted ---
    tile_g = min(tile_g, _round_up(max(dim_size, 1), 8))
    tile_n_eff = _round_up(max(N, 1), 8) if N <= tile_n else tile_n
    tile_f_eff = F if F <= tile_f else tile_f    # ragged last f-block is safe

    use_acc_scratch = out_dtype != jnp.float32
    cap_soft = int(0.6 * _VMEM_CAPACITY)
    for _ in range(8):   # safety net: shrink until the block set fits VMEM
        if _vmem_needed(tile_g, tile_n_eff, tile_f_eff, itemsize,
                        out_itemsize, use_acc_scratch) <= cap_soft:
            break
        if tile_f_eff > 256:
            tile_f_eff = max(256, _round_up(_cdiv(tile_f_eff, 2), 128))
        elif tile_n_eff > 256:
            tile_n_eff = max(256, _round_up(_cdiv(tile_n_eff, 2), 128))
        elif tile_g > 128:
            tile_g = max(128, _round_up(_cdiv(tile_g, 2), 8))
        else:
            break

    g_pad = _round_up(max(dim_size, 1), tile_g)
    g_tiles = g_pad // tile_g
    n_tiles = _cdiv(max(N, 1), tile_n_eff)
    n_pad = n_tiles * tile_n_eff
    f_tiles = _cdiv(F, tile_f_eff)

    # v7x: make sure both TensorCores get a "parallel" tile to work on.
    if _IS_V7 and g_tiles * f_tiles == 1:
        if F > 128:
            tile_f_eff = max(128, _round_up(_cdiv(F, 2), 128))
            f_tiles = _cdiv(F, tile_f_eff)
        elif dim_size > 8:
            tile_g = max(8, _round_up(_cdiv(dim_size, 2), 8))
            g_pad = _round_up(max(dim_size, 1), tile_g)
            g_tiles = g_pad // tile_g

    has_ragged_n = n_pad != N

    # ---- pad only the tiny index row (N*4 bytes); x stays untouched in HBM --
    idx_row = jnp.full((1, n_pad), -1, jnp.int32)
    idx_row = idx_row.at[0, :N].set(index.astype(jnp.int32))

    scratch_shapes = ([pltpu.VMEM((tile_g, tile_f_eff), jnp.float32)]
                      if use_acc_scratch else [])

    need = _vmem_needed(tile_g, tile_n_eff, tile_f_eff, itemsize,
                        out_itemsize, use_acc_scratch)
    vmem_limit = int(min(max(2 * need, 32 * 2 ** 20),
                         int(0.8 * _VMEM_CAPACITY)))

    windowed = ptr is not None
    kernel = _make_scatter_sum_kernel(N, n_tiles, has_ragged_n,
                                      use_acc_scratch, windowed)
    grid = (g_tiles, f_tiles, n_tiles)
    out_shape = jax.ShapeDtypeStruct((g_pad, F), out_dtype)
    compiler_params = pltpu.CompilerParams(
        dimension_semantics=("parallel", "parallel", "arbitrary"),
        vmem_limit_bytes=vmem_limit)

    if not windowed:
        grid_spec = pltpu.PrefetchScalarGridSpec(
            num_scalar_prefetch=0,
            grid=grid,
            in_specs=[
                pl.BlockSpec((1, tile_n_eff), lambda g, f, n: (0, n)),       # idx
                pl.BlockSpec((tile_n_eff, tile_f_eff), lambda g, f, n: (n, f)),  # x
            ],
            out_specs=pl.BlockSpec((tile_g, tile_f_eff), lambda g, f, n: (g, f)),
            scratch_shapes=scratch_shapes)
        out = pl.pallas_call(kernel, out_shape=out_shape, grid_spec=grid_spec,
                             compiler_params=compiler_params)(idx_row, x)
        return out[:dim_size]

    # ---- CSR fast path: per-g-tile n-block windows via scalar prefetch ------
    ptr = ptr.astype(jnp.int32)
    g_ids = jnp.arange(g_tiles, dtype=jnp.int32)
    lo = jnp.minimum(g_ids * tile_g, dim_size)
    hi = jnp.minimum((g_ids + 1) * tile_g, dim_size)
    row_lo = ptr[lo]
    row_hi = ptr[hi]
    blk_lo = row_lo // tile_n_eff
    blk_hi = (row_hi + tile_n_eff - 1) // tile_n_eff
    nblk = jnp.maximum(blk_hi - blk_lo, 0).astype(jnp.int32)
    nstart = jnp.minimum(blk_lo, n_tiles - 1).astype(jnp.int32)

    def _win(g, n, nstart_ref, nblk_ref):
        # Clamp trailing (inactive) steps to the last useful block so Pallas
        # sees a repeated block index and skips the DMA.
        last = nstart_ref[g] + jnp.maximum(nblk_ref[g], 1) - 1
        return jnp.minimum(nstart_ref[g] + n, last)

    grid_spec = pltpu.PrefetchScalarGridSpec(
        num_scalar_prefetch=2,
        grid=grid,
        in_specs=[
            pl.BlockSpec((1, tile_n_eff),
                         lambda g, f, n, ns, nb: (0, _win(g, n, ns, nb))),
            pl.BlockSpec((tile_n_eff, tile_f_eff),
                         lambda g, f, n, ns, nb: (_win(g, n, ns, nb), f)),
        ],
        out_specs=pl.BlockSpec((tile_g, tile_f_eff),
                               lambda g, f, n, ns, nb: (g, f)),
        scratch_shapes=scratch_shapes)
    out = pl.pallas_call(kernel, out_shape=out_shape, grid_spec=grid_spec,
                         compiler_params=compiler_params)(nstart, nblk,
                                                          idx_row, x)
    return out[:dim_size]


class AggregationPallas:
    """JAX/Pallas analogue of torch_geometric Aggregation (sum reduce).

    Out-of-range indices (negative or >= dim_size) are silently dropped by the
    one-hot compare rather than raising (differs from strict scatter).
    """

    def __call__(self, x, index=None, ptr=None, dim_size=None, dim=-2):
        if x.ndim != 2 or dim not in (-2, 0):
            raise ValueError("Aggregation requires 2-D input and dim in {-2, 0}")
        if index is None and ptr is None:
            index = jnp.zeros((x.shape[0],), jnp.int32)
            if dim_size is None:
                dim_size = 1
        if ptr is not None:
            if dim_size is None:
                dim_size = int(ptr.shape[0]) - 1
            # CSR boundaries -> per-row group index (plain-JAX glue); ptr also
            # drives the sorted/windowed fast path inside the kernel wrapper.
            index = (jnp.searchsorted(ptr, jnp.arange(x.shape[0]),
                                      side="right") - 1).astype(jnp.int32)
        if dim_size is None:
            raise ValueError("dim_size must be statically provided "
                             "(no dynamic shapes)")
        return pallas_scatter_sum(x, index, dim_size=int(dim_size), ptr=ptr)


if __name__ == "__main__":
    key = jax.random.PRNGKey(0)
    # Mirrors the docstring example: 10 elements, 64 features, 3 groups.
    N, F, G = 10, 64, 3
    x = jax.random.normal(key, (N, F), dtype=jnp.float32)
    index = jnp.array([0, 0, 1, 0, 2, 0, 2, 1, 0, 2], dtype=jnp.int32)
    ptr = jnp.array([0, 4, 7, 10], dtype=jnp.int32)           # CSR variant
    x_sorted = x[jnp.argsort(index, stable=True)]

    aggr = AggregationPallas()

    out_idx = aggr(x, index=index, dim_size=G)
    jax.block_until_ready(out_idx)
    out_ptr = aggr(x_sorted, ptr=ptr)
    jax.block_until_ready(out_ptr)

    ref_idx = jax.ops.segment_sum(x, index, num_segments=G)
    ref_ptr = jax.ops.segment_sum(
        x_sorted,
        jnp.searchsorted(ptr, jnp.arange(N), side="right") - 1,
        num_segments=G)

    assert out_idx.shape == (G, F) and out_ptr.shape == (G, F)
    assert jnp.allclose(out_idx, ref_idx, atol=1e-5, rtol=1e-5)
    assert jnp.allclose(out_ptr, ref_ptr, atol=1e-5, rtol=1e-5)

    # bf16 path (exercises the f32 VMEM accumulator scratch).
    x_bf16 = x.astype(jnp.bfloat16)
    out_bf16 = aggr(x_bf16, index=index, dim_size=G)
    jax.block_until_ready(out_bf16)
    ref_bf16 = jax.ops.segment_sum(x_bf16.astype(jnp.float32), index,
                                   num_segments=G)
    assert jnp.allclose(out_bf16.astype(jnp.float32), ref_bf16,
                        atol=5e-2, rtol=5e-2)

    # Multi-tile exercise (dense path): forces g/f/n tiling, ragged edge block
    # and the gated in-kernel zero-masking of out-of-range rows.
    N2, F2, G2 = 300, 256, 20
    x2 = jax.random.normal(jax.random.PRNGKey(1), (N2, F2), dtype=jnp.float32)
    idx2 = jax.random.randint(jax.random.PRNGKey(2), (N2,), 0, G2,
                              dtype=jnp.int32)
    out2 = pallas_scatter_sum(x2, idx2, dim_size=G2,
                              tile_n=128, tile_g=8, tile_f=128)
    jax.block_until_ready(out2)
    ref2 = jax.ops.segment_sum(x2, idx2, num_segments=G2)
    assert out2.shape == (G2, F2)
    assert jnp.allclose(out2, ref2, atol=1e-3, rtol=1e-3)

    # Multi-tile exercise (CSR windowed fast path): sorted index + ptr with
    # data-dependent, scalar-prefetched n-block windows.
    idx2_sorted = jnp.sort(idx2)
    ptr2 = jnp.searchsorted(idx2_sorted, jnp.arange(G2 + 1),
                            side="left").astype(jnp.int32)
    out3 = pallas_scatter_sum(x2, idx2_sorted, dim_size=G2, ptr=ptr2,
                              tile_n=128, tile_g=8, tile_f=128)
    jax.block_until_ready(out3)
    ref3 = jax.ops.segment_sum(x2, idx2_sorted, num_segments=G2)
    assert jnp.allclose(out3, ref3, atol=1e-3, rtol=1e-3)

    print("KERNEL_OK")
</pallas_src>

<mosaic_0001>
module attributes {stable_mosaic.version = 11 : i64} {
  func.func @kernel(%arg0: i32, %arg1: i32, %arg2: i32, %arg3: memref<1x16xi32, #tpu.memory_space<vmem>>, %arg4: memref<16x64xf32, #tpu.memory_space<vmem>>, %arg5: memref<8x64xf32, #tpu.memory_space<vmem>>) attributes {dimension_semantics = [#tpu.dimension_semantics<parallel>, #tpu.dimension_semantics<parallel>, #tpu.dimension_semantics<arbitrary>], iteration_bounds = array<i64: 1, 1, 1>, scalar_prefetch = 0 : i64, scratch_operands = 0 : i64, tpu.core_type = #tpu.core_type<tc>, window_params = [{transform_indices = @transform_0, window_bounds = array<i64: 1, 16>}, {transform_indices = @transform_1, window_bounds = array<i64: 16, 64>}, {transform_indices = @transform_2, window_bounds = array<i64: 8, 64>}]} {
    %c0_i32 = arith.constant 0 : i32
    %0 = arith.cmpi eq, %arg2, %c0_i32 : i32
    %1 = arith.extui %0 : i1 to i32
    %c0_i32_0 = arith.constant 0 : i32
    %2 = arith.cmpi ne, %1, %c0_i32_0 : i32
    scf.if %2 {
      %cst = arith.constant 0.000000e+00 : f32
      %10 = vector.broadcast %cst : f32 to vector<8x64xf32>
      %c0 = arith.constant 0 : index
      %c0_4 = arith.constant 0 : index
      %11 = vector.load %arg5[%c0, %c0_4] : memref<8x64xf32, #tpu.memory_space<vmem>>, vector<8x64xf32>
      tpu.vector_store %arg5[%c0, %c0_4], %10 {strides = array<i32>} : memref<8x64xf32, #tpu.memory_space<vmem>>, vector<8x64xf32>,
    } else {
    }
    %c8_i32 = arith.constant 8 : i32
    %3 = arith.muli %arg0, %c8_i32 : i32
    %c0_i32_1 = arith.constant 0 : i32
    %4 = arith.cmpi eq, %arg2, %c0_i32_1 : i32
    %true = arith.constant true
    %5 = arith.xori %4, %true : i1
    %6 = arith.extui %5 : i1 to i32
    %c0_i32_2 = arith.constant 0 : i32
    %7 = arith.cmpi ne, %6, %c0_i32_2 : i32
    scf.if %7 {
      %c0 = arith.constant 0 : index
      %c0_4 = arith.constant 0 : index
      %10 = vector.load %arg4[%c0, %c0_4] : memref<16x64xf32, #tpu.memory_space<vmem>>, vector<16x64xf32>
      %11 = tpu.iota {dimensions = array<i32: 0>} : vector<8x16xi32>
      %12 = vector.broadcast %3 : i32 to vector<8x16xi32>
      %13 = arith.addi %11, %12 : vector<8x16xi32>
      %c0_5 = arith.constant 0 : index
      %c0_6 = arith.constant 0 : index
      %14 = vector.load %arg3[%c0_5, %c0_6] : memref<1x16xi32, #tpu.memory_space<vmem>>, vector<1x16xi32>
      %15 = vector.broadcast %14 : vector<1x16xi32> to vector<8x16xi32>
      %16 = arith.cmpi eq, %13, %15 : vector<8x16xi32>
      %17 = arith.extui %16 : vector<8x16xi1> to vector<8x16xi32>
      %18 = arith.sitofp %17 : vector<8x16xi32> to vector<8x16xf32>
      %c0_7 = arith.constant 0 : index
      %c0_8 = arith.constant 0 : index
      %19 = vector.load %arg5[%c0_7, %c0_8] : memref<8x64xf32, #tpu.memory_space<vmem>>, vector<8x64xf32>
      %cst = arith.constant dense<0.000000e+00> : vector<8x64xf32>
      %20 = tpu.matmul %18, %10, %cst {dimension_numbers = #tpu.dot_dimension_numbers<[1], [0], [0], [1], [0, 0, 1, 1], [], []>} : vector<8x16xf32>, vector<16x64xf32>, vector<8x64xf32> -> vector<8x64xf32>
      %21 = arith.addf %19, %20 : vector<8x64xf32>
      %c0_9 = arith.constant 0 : index
      %c0_10 = arith.constant 0 : index
      %22 = vector.load %arg5[%c0_9, %c0_10] : memref<8x64xf32, #tpu.memory_space<vmem>>, vector<8x64xf32>
      tpu.vector_store %arg5[%c0_9, %c0_10], %21 {strides = array<i32>} : memref<8x64xf32, #tpu.memory_space<vmem>>, vector<8x64xf32>,
    } else {
    }
    %8 = arith.extui %4 : i1 to i32
    %c0_i32_3 = arith.constant 0 : i32
    %9 = arith.cmpi ne, %8, %c0_i32_3 : i32
    scf.if %9 {
      %10 = tpu.iota {dimensions = array<i32: 0>} : vector<16x1xi32>
      %c16_i32 = arith.constant 16 : i32
      %11 = arith.muli %arg2, %c16_i32 : i32
      %12 = vector.broadcast %11 : i32 to vector<16x1xi32>
      %13 = arith.addi %10, %12 : vector<16x1xi32>
      %c10_i32 = arith.constant 10 : i32
      %14 = vector.broadcast %c10_i32 : i32 to vector<16x1xi32>
      %15 = arith.cmpi slt, %13, %14 : vector<16x1xi32>
      %c0 = arith.constant 0 : index
      %c0_4 = arith.constant 0 : index
      %16 = vector.load %arg4[%c0, %c0_4] : memref<16x64xf32, #tpu.memory_space<vmem>>, vector<16x64xf32>
      %c0_i32_5 = arith.constant 0 : i32
      %17 = arith.sitofp %c0_i32_5 : i32 to f32
      %18 = vector.shape_cast %15 : vector<16x1xi1> to vector<16x1xi1>
      %19 = vector.broadcast %18 : vector<16x1xi1> to vector<16x64xi1>
      %20 = vector.broadcast %17 : f32 to vector<16x64xf32>
      %21 = arith.select %19, %16, %20 : vector<16x64xi1>, vector<16x64xf32>
      %22 = tpu.iota {dimensions = array<i32: 0>} : vector<8x16xi32>
      %23 = vector.broadcast %3 : i32 to vector<8x16xi32>
      %24 = arith.addi %22, %23 : vector<8x16xi32>
      %c0_6 = arith.constant 0 : index
      %c0_7 = arith.constant 0 : index
      %25 = vector.load %arg3[%c0_6, %c0_7] : memref<1x16xi32, #tpu.memory_space<vmem>>, vector<1x16xi32>
      %26 = vector.broadcast %25 : vector<1x16xi32> to vector<8x16xi32>
      %27 = arith.cmpi eq, %24, %26 : vector<8x16xi32>
      %28 = arith.extui %27 : vector<8x16xi1> to vector<8x16xi32>
      %29 = arith.sitofp %28 : vector<8x16xi32> to vector<8x16xf32>
      %c0_8 = arith.constant 0 : index
      %c0_9 = arith.constant 0 : index
      %30 = vector.load %arg5[%c0_8, %c0_9] : memref<8x64xf32, #tpu.memory_space<vmem>>, vector<8x64xf32>
      %cst = arith.constant dense<0.000000e+00> : vector<8x64xf32>
      %31 = tpu.matmul %29, %21, %cst {dimension_numbers = #tpu.dot_dimension_numbers<[1], [0], [0], [1], [0, 0, 1, 1], [], []>} : vector<8x16xf32>, vector<16x64xf32>, vector<8x64xf32> -> vector<8x64xf32>
      %32 = arith.addf %30, %31 : vector<8x64xf32>
      %c0_10 = arith.constant 0 : index
      %c0_11 = arith.constant 0 : index
      %33 = vector.load %arg5[%c0_10, %c0_11] : memref<8x64xf32, #tpu.memory_space<vmem>>, vector<8x64xf32>
      tpu.vector_store %arg5[%c0_10, %c0_11], %32 {strides = array<i32>} : memref<8x64xf32, #tpu.memory_space<vmem>>, vector<8x64xf32>,
    } else {
    }
    return
  }
  func.func @transform_0(%arg0: i32, %arg1: i32, %arg2: i32) -> (i32, i32) {
    %c0_i32 = arith.constant 0 : i32
    %c0_i32_0 = arith.constant 0 : i32
    return %c0_i32, %arg2 : i32, i32
  }
  func.func @transform_1(%arg0: i32, %arg1: i32, %arg2: i32) -> (i32, i32) {
    %c0_i32 = arith.constant 0 : i32
    return %arg2, %arg1 : i32, i32
  }
  func.func @transform_2(%arg0: i32, %arg1: i32, %arg2: i32) -> (i32, i32) {
    %c0_i32 = arith.constant 0 : i32
    return %arg0, %arg1 : i32, i32
  }
}

</mosaic_0001>

<bundles_post_ra>
// kernel: pallas_scatter_sum.1
= control target key start
LH: loop header
LB: loop body
LE: loop exit
PB: predicated region body
PF: predicated region fallthrough
CT: control target
= control target key end

     0   :  { %7 = vsyncpa [#allocation3], 0  ;;  %s285_s9 = smov [#allocation2]   ;;  %s322_s0 = inlined_call_operand.vmem [shape: s32[1,16], index: 0, kind: input, shape index: {}]   ;;  %s323_s1 = inlined_call_operand.hbm [shape: f32[10,64], index: 1, kind: input, shape index: {}]   ;;  %s324_s2 = inlined_call_operand.vmem [shape: f32[8,64], index: 2, kind: output, shape index: {}]  }
   0x1   :  { %s15_s10 = sshll.u32 %s285_s9, 4  ;;  %s16_s10 = int_to_ptr.vmem [resolvable:$true] %s15_s10 }
   0x2   :  { %s271_s11 = scalar_lea.vmem %s16_s10, 256  ;;  %p276_p1 = scmp.lt.s32.totalorder %s16_s10, %s16_s10 }
   0x3   :  { %p272_p0 = scmp.ne.s32.totalorder %s16_s10, %s271_s11  ;;  %p277_p2 = scmp.lt.s32.totalorder %s271_s11, %s271_s11 }
   0x5   :  { %p278_p3 = por %p277_p2, %p276_p1 }
   0x7   :  { %p279_p4 = pnand %p278_p3, %p272_p0 }
   0x9   :  { %282 = shalt.err (!%p279_p4)
}
   0xa   :  { %s286_s12 = smov 128   ;;  %s287_s13 = smov 8  }
   0xb   :  { %21 = dma.hbm_to_vmem [thread:$0]  %s323_s1, 256, %s16_s10, [#allocation3], %s286_s12, %s286_s12, %s287_s13  }
   0xc   :  { %283 = dma.done.wait [#allocation3], 256  }
   0xd   :  { %284 = vsyncadd [#allocation3], 4294967040  ;;  %vm29_vm0 = vcmask 523264   ;;  %v131_v0 = vlaneseq  ;;  %v288_v1 = vmov 0.0   ;;  %vm289_vm1 = vmmov 0   ;;  %v141_v4 = vld [vmem:[#allocation2 + $0x8] sm:$0xff] }
   0xe   :  { %30 = vst.msk [vmem:[%s324_s2] sm:$0xff] %vm29_vm0, %v288_v1  ;;  %251 = vmatprep.subr.mxu0 %v288_v1  ;;  %255 = vmatprep.mubr.msk.f32.mxu0 %vm289_vm1, %v288_v1  ;;  %v140_v5 = vld [vmem:[#allocation2] sm:$0xff]  ;;  %vm159_vm4 = vcmask 130048  }
   0xf   :  { %v132_v2 = vshrl.u32 %v131_v0, 7  ;;  %v244_v6 = vld [vmem:[%s322_s0] ss:$0 sm:$0xff] }
  0x11   :  { %v133_v3 = vadd.s32 8, %v132_v2  ;;  %vm155_vm3 = vcmp.eq.s32.totalorder %v132_v2, %v244_v6 }
  0x12   :  { %v245_v7 = vsel %vm155_vm3, 1.0, %v288_v1 }
  0x13   :  { %vm139_vm2 = vcmp.lt.s32.totalorder %v133_v3, 10 }
  0x14   :  { %252 = vmatpush3.msk.msra.mxu0 %vm139_vm2, %v141_v4 }
  0x15   :  { %253 = vmatprep.subr.mxu0 %v288_v1  ;;  %v158_v8 = vld [vmem:[%s324_s2] sm:$0xff] }
  0x16   :  { %254 = vmatpush3.msra.mxu0 %v140_v5 }
  0x17   :  { %256 = vmatmul.mubr.msk.f32.vlgmr.msra.gmra.mxu0 %vm159_vm4, %v245_v7 }
  0xd7   :  { %v229_v9 = vpop.f32.mrf.mxu0 }
  0xd8   :  { %v233_v10 = vadd.f32 %v229_v9, %v158_v8 }
  0xd9   :  { %v257_v11 = vpop.f32.mrf.mxu0 }
  0xda   :  { %235 = vst.msk [vmem:[%s324_s2] sm:$0xff] %vm29_vm0, %v233_v10 }
  0xdb   :  { %240 = vsyncpa [#allocation3], 1 }

</bundles_post_ra>
